<compile_context>
chip_gen: v7x
topology: tpu7x:2x2x1
jax: 0.10.0
libtpu: 0.0.40
codegen_flags: <defaults>
</compile_context>

<pallas_src>
import functools

import jax
import jax.numpy as jnp
from jax import lax
from jax.experimental import pallas as pl
from jax.experimental.pallas import tpu as pltpu


def _mha_fused_kernel(x_ref, w_ref, o_ref, *, n_heads, head_size):
    # x_ref: (Bb, T, C)     f32, batch-block of activations
    # w_ref: (C, 3*NH)      bf16, fused [Q*scale | K | V] weights, NH = n_heads*H
    # o_ref: (Bb, T, NH)    f32, lane-dense output block
    Bb, T, C = x_ref.shape
    NH = n_heads * head_size

    # In-kernel bf16 cast of the activation (rides under MXU slack; avoids a
    # standalone HBM read+write cast pass in the wrapper).
    x = x_ref[...].reshape(Bb * T, C).astype(jnp.bfloat16)        # (Bb*T, C)
    w = w_ref[...]                                                # (C, 3*NH)

    # One wide lane-dense projection matmul on the MXU, f32 accumulation, then a
    # single full-width downcast to bf16 (drops the f32 intermediate early).
    qkv = jnp.dot(x, w, preferred_element_type=jnp.float32)       # (Bb*T, 3*NH) f32
    qkv = qkv.astype(jnp.bfloat16).reshape(Bb, T, 3 * NH)         # (Bb, T, 3*NH) bf16

    q_all = qkv[:, :, 0 * NH:1 * NH]     # scale already folded into the weights
    k_all = qkv[:, :, 1 * NH:2 * NH]
    v_all = qkv[:, :, 2 * NH:3 * NH]

    # Static unroll over heads; each head writes straight into its output
    # columns, so only one (Bb, T, T) score block and one (Bb, T, H) result
    # are live at a time (no concatenate relayout at the end).
    for h in range(n_heads):
        cols = slice(h * head_size, (h + 1) * head_size)
        q = q_all[:, :, cols]                                     # (Bb, T, H) bf16
        k = k_all[:, :, cols]
        v = v_all[:, :, cols]

        # q @ k^T batched over Bb, contracting over head_size (no k transpose).
        s = lax.dot_general(q, k, (((2,), (2,)), ((0,), (0,))),
                            preferred_element_type=jnp.float32)   # (Bb, T, T) f32

        # Numerically stable softmax in f32; exp + approx reciprocal hit the
        # EUP, max/sum reductions the XLU -- free under the MXU-bound regime.
        s = s - jnp.max(s, axis=-1, keepdims=True)
        p = jnp.exp(s)
        p = p * pl.reciprocal(jnp.sum(p, axis=-1, keepdims=True), approx=True)

        out_h = lax.dot_general(p.astype(jnp.bfloat16), v,
                                (((2,), (1,)), ((0,), (0,))),
                                preferred_element_type=jnp.float32)  # (Bb, T, H)
        o_ref[:, :, cols] = out_h.astype(o_ref.dtype)


def pack_mha_weights(wq, wk, wv):
    """Pack per-head weights into one bf16 (C, 3*n_heads*H) slab, [Q*scale|K|V].

    Call ONCE at init (it relayouts the weights in HBM); the toy module's
    softmax scale C**-0.5 (embed dim, NOT head_size) is folded into the Q
    columns in f32 before the bf16 cast.
    """
    n_heads, C, H = wq.shape
    NH = n_heads * H
    scale = float(C) ** -0.5

    def slab(w):                          # (n_heads, C, H) -> (C, n_heads*H)
        return jnp.transpose(w, (1, 0, 2)).reshape(C, NH)

    w_fused = jnp.concatenate([slab(wq) * scale, slab(wk), slab(wv)], axis=-1)
    return w_fused.astype(jnp.bfloat16)


def _vmem_limit_bytes():
    # Raise the scoped-VMEM limit above the conservative defaults (16 MiB v5e,
    # 32 MiB v6e/v7x) while keeping headroom under physical capacity
    # (128 MiB v5e/v6e -> 96 MiB, 64 MiB v7x -> 48 MiB).
    try:
        cap = pltpu.get_tpu_info().vmem_capacity_bytes
    except Exception:
        cap = 64 * 1024 * 1024
    return int(min(96 * 1024 * 1024, (cap * 3) // 4))


def _pick_batch_block(B, T, C, NH, budget_bytes):
    """Largest divisor of B whose per-step VMEM footprint fits the budget."""
    def est(bb):
        x_blk = 2 * bb * T * C * 4            # f32 input block, double-buffered
        o_blk = 2 * bb * T * NH * 4           # f32 output block, double-buffered
        w_blk = 2 * C * 3 * NH * 2            # bf16 weight slab, double-buffered
        qkv = bb * T * 3 * NH * (4 + 2)       # f32 accumulate + bf16 downcast
        scores = 2 * bb * T * T * 4           # ~two (T, T) f32 intermediates live
        return x_blk + o_blk + w_blk + qkv + scores

    for bb in range(B, 0, -1):
        if B % bb == 0 and est(bb) <= budget_bytes:
            return bb
    return 1


def multi_head_attention_packed(x, w_fused, *, n_heads, head_size, batch_block=None):
    """x: (B, T, C) f32; w_fused: pack_mha_weights() output.  Returns (B, T, NH) f32."""
    B, T, C = x.shape
    NH = n_heads * head_size
    assert w_fused.shape == (C, 3 * NH), w_fused.shape

    vmem_limit = _vmem_limit_bytes()
    bb = batch_block if batch_block is not None else _pick_batch_block(
        B, T, C, NH, vmem_limit // 2)
    assert B % bb == 0

    kernel = functools.partial(_mha_fused_kernel, n_heads=n_heads,
                               head_size=head_size)

    # TODO(synk): for long sequences (T >= ~512) add a KV grid axis ("arbitrary")
    # with an online-softmax (flash) accumulator plus a "parallel" Tq axis so the
    # (T, T) scores stream through VMEM instead of living whole -- required for
    # v7x's 64 MiB VMEM at BERT sequence lengths, and plan it mask-aware.
    # TODO(synk): on v7x, single-buffer the grid-invariant weight slab
    # (pipeline_mode=pl.Buffered(1)) once verified on the target jax build; its
    # block index never changes, so the default second buffer is wasted VMEM.
    return pl.pallas_call(
        kernel,
        out_shape=jax.ShapeDtypeStruct((B, T, NH), jnp.float32),
        grid_spec=pltpu.PrefetchScalarGridSpec(
            num_scalar_prefetch=0,
            grid=(B // bb,),
            in_specs=[
                pl.BlockSpec((bb, T, C), lambda b: (b, 0, 0)),   # activations (f32)
                pl.BlockSpec((C, 3 * NH), lambda b: (0, 0)),     # fused weights, VMEM-resident
            ],
            out_specs=pl.BlockSpec((bb, T, NH), lambda b: (b, 0, 0)),
        ),
        compiler_params=pltpu.CompilerParams(
            dimension_semantics=("parallel",),   # batch blocks -> 2 TCs on v7x
            vmem_limit_bytes=vmem_limit,
        ),
    )(x, w_fused)


def multi_head_attention(x, wk, wq, wv, *, batch_block=None):
    """Convenience wrapper matching the PyTorch forward signature.

    NOTE: re-packs the weights on every call -- prefer pack_mha_weights() once
    at init plus multi_head_attention_packed() per step.
    """
    n_heads, _, head_size = wq.shape
    w_fused = pack_mha_weights(wq, wk, wv)
    return multi_head_attention_packed(x, w_fused, n_heads=n_heads,
                                       head_size=head_size, batch_block=batch_block)


def _reference_f32(x, wk, wq, wv):
    """Pure-JAX f32 reference mirroring the PyTorch module exactly."""
    B, T, C = x.shape
    outs = []
    for h in range(wq.shape[0]):
        k = x @ wk[h]
        q = x @ wq[h]
        v = x @ wv[h]
        wei = (q @ jnp.swapaxes(k, -2, -1)) * (C ** -0.5)
        wei = jax.nn.softmax(wei, axis=-1)
        outs.append(wei @ v)
    return jnp.concatenate(outs, axis=-1)


def _reference_bf16(x, wk, wq, wv):
    """Reference mirroring the kernel's bf16-input / f32-accumulate numerics."""
    def bf(a):
        return a.astype(jnp.bfloat16).astype(jnp.float32)

    B, T, C = x.shape
    xb = bf(x)
    scale = C ** -0.5
    outs = []
    for h in range(wq.shape[0]):
        q = bf(xb @ bf(wq[h] * scale))   # scale folded into weights, then bf16 qkv
        k = bf(xb @ bf(wk[h]))
        v = bf(xb @ bf(wv[h]))
        wei = q @ jnp.swapaxes(k, -2, -1)
        wei = jax.nn.softmax(wei, axis=-1)
        outs.append(bf(wei) @ v)
    return jnp.concatenate(outs, axis=-1)


if __name__ == "__main__":
    B, T, n_embd, n_heads = 2, 8, 32, 4
    head_size = n_embd // n_heads

    key = jax.random.PRNGKey(0)
    kx, kk, kq, kv = jax.random.split(key, 4)

    x = jax.random.normal(kx, (B, T, n_embd), dtype=jnp.float32)
    # Deterministic "Linear(bias=False)"-style weights, stored as (n_heads, C, head_size).
    bound = 1.0 / (n_embd ** 0.5)
    wk = jax.random.uniform(kk, (n_heads, n_embd, head_size), jnp.float32, -bound, bound)
    wq = jax.random.uniform(kq, (n_heads, n_embd, head_size), jnp.float32, -bound, bound)
    wv = jax.random.uniform(kv, (n_heads, n_embd, head_size), jnp.float32, -bound, bound)

    # Pack once at "init" (weight relayout + bf16 cast hoisted off the per-call path).
    w_fused = jax.block_until_ready(pack_mha_weights(wq, wk, wv))

    mha = jax.jit(functools.partial(multi_head_attention_packed,
                                    n_heads=n_heads, head_size=head_size))
    out = jax.block_until_ready(mha(x, w_fused))
    assert out.shape == (B, T, n_embd), out.shape

    # Tight check vs. a reference mirroring the kernel's bf16/f32 numerics.
    ref_bf16 = _reference_bf16(x, wk, wq, wv)
    assert jnp.allclose(out, ref_bf16, atol=1e-2, rtol=1e-2), "mismatch vs bf16-mirrored reference"

    # Semantic check vs. the exact f32 PyTorch-equivalent reference (looser
    # tolerance: bf16 matmul inputs + approx softmax reciprocal).
    ref_f32 = _reference_f32(x, wk, wq, wv)
    assert jnp.allclose(out, ref_f32, atol=5e-2, rtol=5e-2), "mismatch vs f32 reference"

    print("KERNEL_OK")
</pallas_src>

<mosaic_0001>
module attributes {stable_mosaic.version = 11 : i64} {
  func.func @_mha_fused_kernel(%arg0: i32, %arg1: memref<2x8x32xf32, #tpu.memory_space<vmem>>, %arg2: memref<32x96xbf16, #tpu.memory_space<vmem>>, %arg3: memref<2x8x32xf32, #tpu.memory_space<vmem>>) attributes {dimension_semantics = [#tpu.dimension_semantics<parallel>], iteration_bounds = array<i64: 1>, scalar_prefetch = 0 : i64, scratch_operands = 0 : i64, tpu.core_type = #tpu.core_type<tc>, window_params = [{transform_indices = @transform_0, window_bounds = array<i64: 2, 8, 32>}, {pipeline_mode = #tpu.pipeline_mode<synchronous>, transform_indices = @transform_1, window_bounds = array<i64: 32, 96>}, {transform_indices = @transform_2, window_bounds = array<i64: 2, 8, 32>}]} {
    %c0 = arith.constant 0 : index
    %c0_0 = arith.constant 0 : index
    %c0_1 = arith.constant 0 : index
    %0 = vector.load %arg1[%c0, %c0_0, %c0_1] : memref<2x8x32xf32, #tpu.memory_space<vmem>>, vector<2x8x32xf32>
    %1 = vector.shape_cast %0 : vector<2x8x32xf32> to vector<16x32xf32>
    %2 = arith.truncf %1 : vector<16x32xf32> to vector<16x32xbf16>
    %c0_2 = arith.constant 0 : index
    %c0_3 = arith.constant 0 : index
    %3 = vector.load %arg2[%c0_2, %c0_3] : memref<32x96xbf16, #tpu.memory_space<vmem>>, vector<32x96xbf16>
    %cst = arith.constant dense<0.000000e+00> : vector<16x96xf32>
    %4 = tpu.matmul %2, %3, %cst {dimension_numbers = #tpu.dot_dimension_numbers<[1], [0], [0], [1], [0, 0, 1, 1], [], []>} : vector<16x32xbf16>, vector<32x96xbf16>, vector<16x96xf32> -> vector<16x96xf32>
    %5 = arith.truncf %4 : vector<16x96xf32> to vector<16x96xbf16>
    %6 = vector.shape_cast %5 : vector<16x96xbf16> to vector<2x8x96xbf16>
    %7 = vector.extract_strided_slice %6 {offsets = [0, 0, 0], sizes = [2, 8, 32], strides = [1, 1, 1]} : vector<2x8x96xbf16> to vector<2x8x32xbf16>
    %8 = vector.extract_strided_slice %6 {offsets = [0, 0, 32], sizes = [2, 8, 32], strides = [1, 1, 1]} : vector<2x8x96xbf16> to vector<2x8x32xbf16>
    %9 = vector.extract_strided_slice %6 {offsets = [0, 0, 64], sizes = [2, 8, 32], strides = [1, 1, 1]} : vector<2x8x96xbf16> to vector<2x8x32xbf16>
    %10 = vector.extract_strided_slice %7 {offsets = [0, 0, 0], sizes = [2, 8, 8], strides = [1, 1, 1]} : vector<2x8x32xbf16> to vector<2x8x8xbf16>
    %11 = vector.extract_strided_slice %8 {offsets = [0, 0, 0], sizes = [2, 8, 8], strides = [1, 1, 1]} : vector<2x8x32xbf16> to vector<2x8x8xbf16>
    %12 = vector.extract_strided_slice %9 {offsets = [0, 0, 0], sizes = [2, 8, 8], strides = [1, 1, 1]} : vector<2x8x32xbf16> to vector<2x8x8xbf16>
    %cst_4 = arith.constant dense<0.000000e+00> : vector<2x8x8xf32>
    %13 = tpu.matmul %10, %11, %cst_4 {dimension_numbers = #tpu.dot_dimension_numbers<[2], [2], [1], [1], [0, 0, 0, 1, 1, 1], [0], [0]>} : vector<2x8x8xbf16>, vector<2x8x8xbf16>, vector<2x8x8xf32> -> vector<2x8x8xf32>
    %cst_5 = arith.constant dense<0xFF800000> : vector<2x8xf32>
    %14 = vector.multi_reduction <maximumf>, %13, %cst_5 [2] : vector<2x8x8xf32> to vector<2x8xf32>
    %15 = vector.shape_cast %14 : vector<2x8xf32> to vector<2x8x1xf32>
    %16 = vector.broadcast %15 : vector<2x8x1xf32> to vector<2x8x8xf32>
    %17 = arith.subf %13, %16 : vector<2x8x8xf32>
    %18 = math.exp %17 : vector<2x8x8xf32>
    %cst_6 = arith.constant dense<0.000000e+00> : vector<2x8xf32>
    %19 = vector.multi_reduction <add>, %18, %cst_6 [2] : vector<2x8x8xf32> to vector<2x8xf32>
    %20 = vector.shape_cast %19 : vector<2x8xf32> to vector<2x8x1xf32>
    %21 = tpu.reciprocal %20 {approx = true} : vector<2x8x1xf32> -> vector<2x8x1xf32>
    %22 = vector.broadcast %21 : vector<2x8x1xf32> to vector<2x8x8xf32>
    %23 = arith.mulf %18, %22 : vector<2x8x8xf32>
    %24 = arith.truncf %23 : vector<2x8x8xf32> to vector<2x8x8xbf16>
    %cst_7 = arith.constant dense<0.000000e+00> : vector<2x8x8xf32>
    %25 = tpu.matmul %24, %12, %cst_7 {dimension_numbers = #tpu.dot_dimension_numbers<[2], [1], [1], [2], [0, 0, 0, 1, 1, 2], [0], [0]>} : vector<2x8x8xbf16>, vector<2x8x8xbf16>, vector<2x8x8xf32> -> vector<2x8x8xf32>
    %c0_8 = arith.constant 0 : index
    %c0_9 = arith.constant 0 : index
    %c0_10 = arith.constant 0 : index
    %26 = vector.load %arg3[%c0_8, %c0_9, %c0_10] : memref<2x8x32xf32, #tpu.memory_space<vmem>>, vector<2x8x8xf32>
    tpu.vector_store %arg3[%c0_8, %c0_9, %c0_10], %25 {strides = array<i32>} : memref<2x8x32xf32, #tpu.memory_space<vmem>>, vector<2x8x8xf32>,
    %27 = vector.extract_strided_slice %7 {offsets = [0, 0, 8], sizes = [2, 8, 8], strides = [1, 1, 1]} : vector<2x8x32xbf16> to vector<2x8x8xbf16>
    %28 = vector.extract_strided_slice %8 {offsets = [0, 0, 8], sizes = [2, 8, 8], strides = [1, 1, 1]} : vector<2x8x32xbf16> to vector<2x8x8xbf16>
    %29 = vector.extract_strided_slice %9 {offsets = [0, 0, 8], sizes = [2, 8, 8], strides = [1, 1, 1]} : vector<2x8x32xbf16> to vector<2x8x8xbf16>
    %cst_11 = arith.constant dense<0.000000e+00> : vector<2x8x8xf32>
    %30 = tpu.matmul %27, %28, %cst_11 {dimension_numbers = #tpu.dot_dimension_numbers<[2], [2], [1], [1], [0, 0, 0, 1, 1, 1], [0], [0]>} : vector<2x8x8xbf16>, vector<2x8x8xbf16>, vector<2x8x8xf32> -> vector<2x8x8xf32>
    %cst_12 = arith.constant dense<0xFF800000> : vector<2x8xf32>
    %31 = vector.multi_reduction <maximumf>, %30, %cst_12 [2] : vector<2x8x8xf32> to vector<2x8xf32>
    %32 = vector.shape_cast %31 : vector<2x8xf32> to vector<2x8x1xf32>
    %33 = vector.broadcast %32 : vector<2x8x1xf32> to vector<2x8x8xf32>
    %34 = arith.subf %30, %33 : vector<2x8x8xf32>
    %35 = math.exp %34 : vector<2x8x8xf32>
    %cst_13 = arith.constant dense<0.000000e+00> : vector<2x8xf32>
    %36 = vector.multi_reduction <add>, %35, %cst_13 [2] : vector<2x8x8xf32> to vector<2x8xf32>
    %37 = vector.shape_cast %36 : vector<2x8xf32> to vector<2x8x1xf32>
    %38 = tpu.reciprocal %37 {approx = true} : vector<2x8x1xf32> -> vector<2x8x1xf32>
    %39 = vector.broadcast %38 : vector<2x8x1xf32> to vector<2x8x8xf32>
    %40 = arith.mulf %35, %39 : vector<2x8x8xf32>
    %41 = arith.truncf %40 : vector<2x8x8xf32> to vector<2x8x8xbf16>
    %cst_14 = arith.constant dense<0.000000e+00> : vector<2x8x8xf32>
    %42 = tpu.matmul %41, %29, %cst_14 {dimension_numbers = #tpu.dot_dimension_numbers<[2], [1], [1], [2], [0, 0, 0, 1, 1, 2], [0], [0]>} : vector<2x8x8xbf16>, vector<2x8x8xbf16>, vector<2x8x8xf32> -> vector<2x8x8xf32>
    %c0_15 = arith.constant 0 : index
    %c0_16 = arith.constant 0 : index
    %c8 = arith.constant 8 : index
    %43 = vector.load %arg3[%c0_15, %c0_16, %c8] : memref<2x8x32xf32, #tpu.memory_space<vmem>>, vector<2x8x8xf32>
    tpu.vector_store %arg3[%c0_15, %c0_16, %c8], %42 {strides = array<i32>} : memref<2x8x32xf32, #tpu.memory_space<vmem>>, vector<2x8x8xf32>,
    %44 = vector.extract_strided_slice %7 {offsets = [0, 0, 16], sizes = [2, 8, 8], strides = [1, 1, 1]} : vector<2x8x32xbf16> to vector<2x8x8xbf16>
    %45 = vector.extract_strided_slice %8 {offsets = [0, 0, 16], sizes = [2, 8, 8], strides = [1, 1, 1]} : vector<2x8x32xbf16> to vector<2x8x8xbf16>
    %46 = vector.extract_strided_slice %9 {offsets = [0, 0, 16], sizes = [2, 8, 8], strides = [1, 1, 1]} : vector<2x8x32xbf16> to vector<2x8x8xbf16>
    %cst_17 = arith.constant dense<0.000000e+00> : vector<2x8x8xf32>
    %47 = tpu.matmul %44, %45, %cst_17 {dimension_numbers = #tpu.dot_dimension_numbers<[2], [2], [1], [1], [0, 0, 0, 1, 1, 1], [0], [0]>} : vector<2x8x8xbf16>, vector<2x8x8xbf16>, vector<2x8x8xf32> -> vector<2x8x8xf32>
    %cst_18 = arith.constant dense<0xFF800000> : vector<2x8xf32>
    %48 = vector.multi_reduction <maximumf>, %47, %cst_18 [2] : vector<2x8x8xf32> to vector<2x8xf32>
    %49 = vector.shape_cast %48 : vector<2x8xf32> to vector<2x8x1xf32>
    %50 = vector.broadcast %49 : vector<2x8x1xf32> to vector<2x8x8xf32>
    %51 = arith.subf %47, %50 : vector<2x8x8xf32>
    %52 = math.exp %51 : vector<2x8x8xf32>
    %cst_19 = arith.constant dense<0.000000e+00> : vector<2x8xf32>
    %53 = vector.multi_reduction <add>, %52, %cst_19 [2] : vector<2x8x8xf32> to vector<2x8xf32>
    %54 = vector.shape_cast %53 : vector<2x8xf32> to vector<2x8x1xf32>
    %55 = tpu.reciprocal %54 {approx = true} : vector<2x8x1xf32> -> vector<2x8x1xf32>
    %56 = vector.broadcast %55 : vector<2x8x1xf32> to vector<2x8x8xf32>
    %57 = arith.mulf %52, %56 : vector<2x8x8xf32>
    %58 = arith.truncf %57 : vector<2x8x8xf32> to vector<2x8x8xbf16>
    %cst_20 = arith.constant dense<0.000000e+00> : vector<2x8x8xf32>
    %59 = tpu.matmul %58, %46, %cst_20 {dimension_numbers = #tpu.dot_dimension_numbers<[2], [1], [1], [2], [0, 0, 0, 1, 1, 2], [0], [0]>} : vector<2x8x8xbf16>, vector<2x8x8xbf16>, vector<2x8x8xf32> -> vector<2x8x8xf32>
    %c0_21 = arith.constant 0 : index
    %c0_22 = arith.constant 0 : index
    %c16 = arith.constant 16 : index
    %60 = vector.load %arg3[%c0_21, %c0_22, %c16] : memref<2x8x32xf32, #tpu.memory_space<vmem>>, vector<2x8x8xf32>
    tpu.vector_store %arg3[%c0_21, %c0_22, %c16], %59 {strides = array<i32>} : memref<2x8x32xf32, #tpu.memory_space<vmem>>, vector<2x8x8xf32>,
    %61 = vector.extract_strided_slice %7 {offsets = [0, 0, 24], sizes = [2, 8, 8], strides = [1, 1, 1]} : vector<2x8x32xbf16> to vector<2x8x8xbf16>
    %62 = vector.extract_strided_slice %8 {offsets = [0, 0, 24], sizes = [2, 8, 8], strides = [1, 1, 1]} : vector<2x8x32xbf16> to vector<2x8x8xbf16>
    %63 = vector.extract_strided_slice %9 {offsets = [0, 0, 24], sizes = [2, 8, 8], strides = [1, 1, 1]} : vector<2x8x32xbf16> to vector<2x8x8xbf16>
    %cst_23 = arith.constant dense<0.000000e+00> : vector<2x8x8xf32>
    %64 = tpu.matmul %61, %62, %cst_23 {dimension_numbers = #tpu.dot_dimension_numbers<[2], [2], [1], [1], [0, 0, 0, 1, 1, 1], [0], [0]>} : vector<2x8x8xbf16>, vector<2x8x8xbf16>, vector<2x8x8xf32> -> vector<2x8x8xf32>
    %cst_24 = arith.constant dense<0xFF800000> : vector<2x8xf32>
    %65 = vector.multi_reduction <maximumf>, %64, %cst_24 [2] : vector<2x8x8xf32> to vector<2x8xf32>
    %66 = vector.shape_cast %65 : vector<2x8xf32> to vector<2x8x1xf32>
    %67 = vector.broadcast %66 : vector<2x8x1xf32> to vector<2x8x8xf32>
    %68 = arith.subf %64, %67 : vector<2x8x8xf32>
    %69 = math.exp %68 : vector<2x8x8xf32>
    %cst_25 = arith.constant dense<0.000000e+00> : vector<2x8xf32>
    %70 = vector.multi_reduction <add>, %69, %cst_25 [2] : vector<2x8x8xf32> to vector<2x8xf32>
    %71 = vector.shape_cast %70 : vector<2x8xf32> to vector<2x8x1xf32>
    %72 = tpu.reciprocal %71 {approx = true} : vector<2x8x1xf32> -> vector<2x8x1xf32>
    %73 = vector.broadcast %72 : vector<2x8x1xf32> to vector<2x8x8xf32>
    %74 = arith.mulf %69, %73 : vector<2x8x8xf32>
    %75 = arith.truncf %74 : vector<2x8x8xf32> to vector<2x8x8xbf16>
    %cst_26 = arith.constant dense<0.000000e+00> : vector<2x8x8xf32>
    %76 = tpu.matmul %75, %63, %cst_26 {dimension_numbers = #tpu.dot_dimension_numbers<[2], [1], [1], [2], [0, 0, 0, 1, 1, 2], [0], [0]>} : vector<2x8x8xbf16>, vector<2x8x8xbf16>, vector<2x8x8xf32> -> vector<2x8x8xf32>
    %c0_27 = arith.constant 0 : index
    %c0_28 = arith.constant 0 : index
    %c24 = arith.constant 24 : index
    %77 = vector.load %arg3[%c0_27, %c0_28, %c24] : memref<2x8x32xf32, #tpu.memory_space<vmem>>, vector<2x8x8xf32>
    tpu.vector_store %arg3[%c0_27, %c0_28, %c24], %76 {strides = array<i32>} : memref<2x8x32xf32, #tpu.memory_space<vmem>>, vector<2x8x8xf32>,
    return
  }
  func.func @transform_0(%arg0: i32) -> (i32, i32, i32) {
    %c0_i32 = arith.constant 0 : i32
    %c0_i32_0 = arith.constant 0 : i32
    %c0_i32_1 = arith.constant 0 : i32
    return %arg0, %c0_i32, %c0_i32_0 : i32, i32, i32
  }
  func.func @transform_1(%arg0: i32) -> (i32, i32) {
    %c0_i32 = arith.constant 0 : i32
    %c0_i32_0 = arith.constant 0 : i32
    %c0_i32_1 = arith.constant 0 : i32
    return %c0_i32, %c0_i32_0 : i32, i32
  }
  func.func @transform_2(%arg0: i32) -> (i32, i32, i32) {
    %c0_i32 = arith.constant 0 : i32
    %c0_i32_0 = arith.constant 0 : i32
    %c0_i32_1 = arith.constant 0 : i32
    return %arg0, %c0_i32, %c0_i32_0 : i32, i32, i32
  }
}

</mosaic_0001>

<bundles_post_ra>
// kernel: multi_head_attention_packed.1
= control target key start
LH: loop header
LB: loop body
LE: loop exit
PB: predicated region body
PF: predicated region fallthrough
CT: control target
= control target key end

     0   :  { %7 = vsyncpa [#allocation3], 0  ;;  %s1555_s0 = inlined_call_operand.hbm [shape: f32[2,8,32], index: 0, kind: input, shape index: {}]   ;;  %s1556_s1 = inlined_call_operand.hbm [shape: bf16[32,96], index: 1, kind: input, shape index: {}]   ;;  %s1557_s2 = inlined_call_operand.hbm [shape: f32[2,8,32], index: 2, kind: output, shape index: {}]  }
   0x1   :  { %8 = vsyncpa [#allocation6], 0 }
   0x2   :  { %9 = vsyncpa [#allocation4], 0  ;;  %s1331_s9 = smov [#allocation2]   ;;  %s1259_s13 = scalar_lea.hbm %s1555_s0, 256 }
   0x3   :  { %s15_s10 = sshll.u32 %s1331_s9, 4  ;;  %p1260_p0 = scmp.ne.s32.totalorder %s1555_s0, %s1259_s13  ;;  %s16_s10 = int_to_ptr.vmem [resolvable:$true] %s15_s10 }
   0x4   :  { %p1263_p1 = scmp.lt.u32.totalorder %s1259_s13, %s1555_s0 }
   0x6   :  { %p1265_p2 = pnand %p1263_p1, %p1260_p0 }
   0x8   :  { %1268 = shalt.err (!%p1265_p2)
}
   0x9   :  { %s1269_s18 = scalar_lea.vmem %s16_s10, 256  ;;  %p1274_p4 = scmp.lt.s32.totalorder %s16_s10, %s16_s10 }
   0xa   :  { %p1270_p3 = scmp.ne.s32.totalorder %s16_s10, %s1269_s18  ;;  %p1275_p5 = scmp.lt.s32.totalorder %s1269_s18, %s1269_s18 }
   0xc   :  { %p1276_p6 = por %p1275_p5, %p1274_p4 }
   0xe   :  { %p1277_p7 = pnand %p1276_p6, %p1270_p3 }
  0x10   :  { %1280 = shalt.err (!%p1277_p7)
}
  0x11   :  { %s1332_s19 = smov 128   ;;  %s1333_s20 = smov 8  }
  0x12   :  { %21 = dma.hbm_to_vmem [thread:$0]  %s1555_s0, 256, %s16_s10, [#allocation3], %s1332_s19, %s1332_s19, %s1333_s20  }
  0x13   :  { %s1334_s23 = smov [#allocation5]   ;;  %s1281_s27 = scalar_lea.hbm %s1556_s1, 256 }
  0x14   :  { %s27_s24 = sshll.u32 %s1334_s23, 4  ;;  %p1282_p8 = scmp.ne.s32.totalorder %s1556_s1, %s1281_s27  ;;  %s28_s24 = int_to_ptr.vmem [resolvable:$true] %s27_s24 }
  0x15   :  { %p1285_p9 = scmp.lt.u32.totalorder %s1281_s27, %s1556_s1 }
  0x17   :  { %p1287_p10 = pnand %p1285_p9, %p1282_p8 }
  0x19   :  { %1290 = shalt.err (!%p1287_p10)
}
  0x1a   :  { %s1291_s4 = scalar_lea.vmem %s28_s24, 256  ;;  %p1296_p12 = scmp.lt.s32.totalorder %s28_s24, %s28_s24 }
  0x1b   :  { %p1292_p11 = scmp.ne.s32.totalorder %s28_s24, %s1291_s4  ;;  %p1297_p13 = scmp.lt.s32.totalorder %s1291_s4, %s1291_s4 }
  0x1d   :  { %p1298_p0 = por %p1297_p13, %p1296_p12 }
  0x1f   :  { %p1299_p1 = pnand %p1298_p0, %p1292_p11 }
  0x21   :  { %1302 = shalt.err (!%p1299_p1)
}
  0x22   :  { %s1335_s0 = smov 64   ;;  %s1336_s5 = smov 4  }
  0x23   :  { %33 = dma.hbm_to_vmem [thread:$0]  %s1556_s1, 256, %s28_s24, [#allocation6], %s1335_s0, %s1335_s0, %s1336_s5  }
  0x24   :  { %1325 = dma.done.wait [#allocation3], 256  }
  0x25   :  { %1326 = vsyncadd [#allocation3], 4294967040 }
  0x26   :  { %1327 = dma.done.wait [#allocation6], 256  }
  0x27   :  { %1328 = vsyncadd [#allocation6], 4294967040  ;;  %v1337_v0 = vmov 0.0   ;;  %vm1338_vm0 = vmmov 0   ;;  %v1225_v1 = vld [vmem:[#allocation5] sm:$0xff]   ;;  %v1226_v2 = vld [vmem:[#allocation5 + $0x8] sm:$0xff]  }
  0x28   :  { %1100 = vmatprep.subr.bf16.mxu0 %v1337_v0  ;;  %1104 = vmatprep.mubr.msk.bf16.mxu0 %vm1338_vm0, %v1337_v0  ;;  %v41_v3 = vld [vmem:[#allocation2] sm:$0xff]  ;;  %v42_v4 = vld [vmem:[#allocation2 + $0x8] sm:$0xff]  ;;  %vm60_vm1 = vcmask 261120   ;;  %s1339_s1 = smov 96   ;;  %vm113_vm2 = vcmask 64512   ;;  %s1340_s8 = smov 88  }
  0x29   :  { %1108 = vmatprep.subr.bf16.mxu1 %v1337_v0  ;;  %1110 = vmatprep.mubr.msk.bf16.mxu1 %vm1338_vm0, %v1337_v0  ;;  %v43_v5 = vpack.c.bf16 %v42_v4, %v41_v3  ;;  %vm237_vm3 = vcmask 1043456   ;;  %s1341_s9 = smov 120   ;;  %s1342_s10 = smov 56   ;;  %vm559_vm4 = vcmask 130112   ;;  %vm790_vm5 = vcmask 195712  }
  0x2a   :  { %1101 = vmatpush3.bf16.msra.mxu0 %v1225_v1  ;;  %s1343_s11 = smov 80   ;;  %s1344_s12 = smov 112   ;;  %vm1021_vm6 = vcmask 261312  }
  0x2b   :  { %1102 = vmatprep.subr.bf16.mxu0 %v1337_v0  ;;  %s1345_s13 = smov 48   ;;  %s1346_s14 = smov 72  }
  0x2c   :  { %s1347_s15 = smov 104   ;;  %s1348_s16 = smov 40  }
  0x2d   :  { %s1349_s17 = smov 16   ;;  %s1350_s18 = smov 24  }
  0x2e   :  { %1103 = vmatpush3.bf16.msra.mxu0 %v1226_v2  ;;  %s1351_s21 = smov [#allocation7]  }
  0x2f   :  { %1114 = vmatprep.subr.bf16.mxu0 %v1337_v0  ;;  %s1029_s22 = sshll.u32 %s1351_s21, 4  ;;  %s1030_s22 = int_to_ptr.vmem [resolvable:$true] %s1029_s22 }
  0x30   :  { %s1303_s23 = scalar_lea.vmem %s1030_s22, 256  ;;  %p1308_p3 = scmp.lt.s32.totalorder %s1030_s22, %s1030_s22 }
  0x31   :  { %1105 = vmatmul.mubr.msk.bf16.vlgmr.msra.gmra.mrb[0].mxu0 %vm60_vm1, %v43_v5  ;;  %p1304_p2 = scmp.ne.s32.totalorder %s1030_s22, %s1303_s23  ;;  %p1309_p4 = scmp.lt.s32.totalorder %s1303_s23, %s1303_s23 }
  0x32   :  { %1116 = vmatprep.mubr.msk.bf16.mxu0 %vm1338_vm0, %v1337_v0 }
  0x33   :  { %p1310_p5 = por %p1309_p4, %p1308_p3 }
  0x35   :  { %p1311_p6 = pnand %p1310_p5, %p1304_p2 }
 0x104   :  { %v98_v6 = vpop.f32.mrb[0].mxu0 }
 0x105   :  { %v1406_v7 = vpack.c.bf16 %v98_v6, %v98_v6  ;;  %v1106_v8 = vpop.f32.mrb[1].mxu0 }
 0x106   :  { %v101_v9 = vpop.f32.mrb[2].mxu0 }
 0x107   :  { %111 = vrot.lane.b32.xlu0 %v1406_v7, %s1339_s1  ;;  %v1107_v10 = vpop.f32.mrb[3].mxu0  ;;  %v1409_v11 = vpack.c.bf16 %v101_v9, %v101_v9 }
 0x10b   :  { %160 = vrot.lane.b32.xlu0 %v1409_v11, %s1339_s1 }
 0x179   :  { %v112_v12 = vpop.permute.xlu0 %111 }
 0x17a   :  { %v118_v13 = vsel %vm113_vm2, %v112_v12, 0 }
 0x17b   :  { %1109 = vmatpush3.bf16.xpose.msra.mxu1 %v118_v13 }
 0x17c   :  { %1120 = vmatprep.subr.bf16.mxu1 %v1337_v0 }
 0x17d   :  { %v161_v14 = vpop.permute.xlu0 %160 }
 0x17e   :  { %v166_v15 = vsel %vm113_vm2, %v161_v14, 0 }
 0x17f   :  { %1115 = vmatpush3.bf16.xpose.msra.mxu0 %v166_v15 }
 0x180   :  { %1126 = vmatprep.subr.bf16.mxu0 %v1337_v0 }
 0x182   :  { %1111 = vmatmul.mubr.msk.bf16.vlgmr.msra.gmra.mrb[0].mxu1 %vm113_vm2, %v1406_v7 }
 0x183   :  { %1122 = vmatprep.mubr.msk.bf16.mxu1 %vm1338_vm0, %v1337_v0 }
 0x186   :  { %1117 = vmatmul.mubr.msk.bf16.vlgmr.msra.gmra.mrb[4].mxu0 %vm113_vm2, %v1409_v11 }
 0x187   :  { %1128 = vmatprep.mubr.msk.bf16.mxu0 %vm1338_vm0, %v1337_v0 }
 0x255   :  { %v154_v16 = vpop.f32.mrb[0].mxu1 }
 0x256   :  { %v1112_v17 = vpop.f32.mrb[1].mxu1  ;;  %v208_v18 = vsel %vm113_vm2, %v154_v16, -inf }
 0x257   :  { %209 = vmax.xlane.f32.xlu1 %v208_v18  ;;  %v157_v19 = vpop.f32.mrb[2].mxu1 }
 0x258   :  { %v1113_v20 = vpop.f32.mrb[3].mxu1 }
 0x259   :  { %v202_v21 = vpop.f32.mrb[4].mxu0 }
 0x25a   :  { %v1118_v22 = vpop.f32.mrb[5].mxu0  ;;  %v211_v23 = vsel %vm113_vm2, %v202_v21, -inf }
 0x25b   :  { %212 = vmax.xlane.f32.xlu1 %v211_v23  ;;  %v205_v24 = vpop.f32.mrb[6].mxu0 }
 0x25c   :  { %v1119_v25 = vpop.f32.mrb[7].mxu0 }
 0x26c   :  { %232 = vrot.lane.b32.xlu1 %v1406_v7, %s1335_s0 }
 0x270   :  { %281 = vrot.lane.b32.xlu1 %v1409_v11, %s1335_s0 }
 0x274   :  { %333 = vrot.lane.b32.xlu1 %v1406_v7, %s1340_s8 }
 0x2e4   :  { %v210_v26 = vpop.xlane.xlu1 %209 }
 0x2e5   :  { %v214_v27 = vsub.f32 %v154_v16, %v210_v26 }
 0x2e7   :  { %v216_v28 = vmul.f32 1.442695, %v214_v27 }
 0x2e8   :  { %v213_v29 = vpop.xlane.xlu1 %212 }
 0x2e9   :  { %1227 = vpow2.f32 %v216_v28  ;;  %v215_v30 = vsub.f32 %v202_v21, %v213_v29 }
 0x2eb   :  { %v218_v31 = vmul.f32 1.442695, %v215_v30 }
 0x2ec   :  { %v233_v32 = vpop.permute.xlu1 %232 }
 0x2ed   :  { %1229 = vpow2.f32 %v218_v31  ;;  %v239_v33 = vsel %vm237_vm3, %v233_v32, 0 }
 0x2ee   :  { %1121 = vmatpush3.bf16.msra.mxu1 %v239_v33 }
 0x2ef   :  { %1132 = vmatprep.subr.bf16.mxu1 %v1337_v0 }
 0x2f0   :  { %v282_v34 = vpop.permute.xlu1 %281 }
 0x2f1   :  { %v287_v35 = vsel %vm237_vm3, %v282_v34, 0 }
 0x2f2   :  { %1127 = vmatpush3.bf16.msra.mxu0 %v287_v35 }
 0x2f3   :  { %v1228_v36 = vpop.eup %1227  ;;  %1138 = vmatprep.subr.bf16.mxu0 %v1337_v0 }
 0x2f4   :  { %v220_v37 = vsel %vm113_vm2, %v1228_v36, 0.0  ;;  %v334_v40 = vpop.permute.xlu1 %333 }
 0x2f5   :  { %221 = vadd.xlane.f32.xlu0 %v220_v37  ;;  %v339_v47 = vsel %vm113_vm2, %v334_v40, 0 }
 0x2f7   :  { %v1230_v38 = vpop.eup %1229 }
 0x2f8   :  { %v223_v39 = vsel %vm113_vm2, %v1230_v38, 0.0 }
 0x2f9   :  { %224 = vadd.xlane.f32.xlu1 %v223_v39 }
 0x30a   :  { %383 = vrot.lane.b32.xlu1 %v1409_v11, %s1340_s8 }
 0x30b   :  { %331 = vrot.lane.b32.xlu0 %v1406_v7, %s1341_s9 }
 0x30e   :  { %381 = vrot.lane.b32.xlu1 %v1409_v11, %s1341_s9 }
 0x382   :  { %v222_v41 = vpop.xlane.xlu0 %221 }
 0x383   :  { %1231 = vrcp.f32 %v222_v41 }
 0x386   :  { %v225_v42 = vpop.xlane.xlu1 %224  ;;  %v332_v52 = vpop.permute.xlu0 %331 }
 0x387   :  { %1233 = vrcp.f32 %v225_v42 }
 0x38a   :  { %v384_v49 = vpop.permute.xlu1 %383 }
 0x38b   :  { %v389_v51 = vsel %vm113_vm2, %v384_v49, 0 }
 0x38d   :  { %v1232_v43 = vpop.eup %1231 }
 0x38e   :  { %v228_v44 = vmul.f32 %v1232_v43, %v1228_v36  ;;  %v382_v53 = vpop.permute.xlu1 %381 }
 0x390   :  { %v230_v45 = vpack.c.bf16 %v228_v44, %v228_v44 }
 0x391   :  { %v1234_v46 = vpop.eup %1233 }
 0x392   :  { %v229_v48 = vmul.f32 %v1234_v46, %v1230_v38  ;;  %1123 = vmatmul.mubr.msk.bf16.vlgmr.msra.gmra.mrb[4].mxu1 %vm113_vm2, %v230_v45 }
 0x393   :  { %1133 = vmatpush3.bf16.xpose.msra.mxu1 %v339_v47  ;;  %1134 = vmatprep.mubr.msk.bf16.mxu1 %vm1338_vm0, %v1337_v0 }
 0x394   :  { %v231_v50 = vpack.c.bf16 %v229_v48, %v229_v48  ;;  %1144 = vmatprep.subr.bf16.mxu1 %v1337_v0 }
 0x396   :  { %1129 = vmatmul.mubr.msk.bf16.vlgmr.msra.gmra.mrb[8].mxu0 %vm113_vm2, %v231_v50 }
 0x397   :  { %1139 = vmatpush3.bf16.xpose.msra.mxu0 %v389_v51  ;;  %1140 = vmatprep.mubr.msk.bf16.mxu0 %vm1338_vm0, %v1337_v0 }
 0x398   :  { %1150 = vmatprep.subr.bf16.mxu0 %v1337_v0 }
 0x39a   :  { %1135 = vmatmul.mubr.msk.bf16.vlgmr.msra.gmra.mrb[8].mxu1 %vm113_vm2, %v332_v52 }
 0x39b   :  { %1146 = vmatprep.mubr.msk.bf16.mxu1 %vm1338_vm0, %v1337_v0 }
 0x39e   :  { %1141 = vmatmul.mubr.msk.bf16.vlgmr.msra.gmra.mrb[12].mxu0 %vm113_vm2, %v382_v53 }
 0x39f   :  { %1152 = vmatprep.mubr.msk.bf16.mxu0 %vm1338_vm0, %v1337_v0 }
 0x465   :  { %v275_v54 = vpop.f32.mrb[4].mxu1 }
 0x466   :  { %329 = vst.msk [vmem:[#allocation7] sm:$0xff] %vm113_vm2, %v275_v54  ;;  %v1124_v55 = vpop.f32.mrb[5].mxu1 }
 0x467   :  { %v278_v56 = vpop.f32.mrb[6].mxu1 }
 0x468   :  { %v1125_v57 = vpop.f32.mrb[7].mxu1 }
 0x469   :  { %v323_v58 = vpop.f32.mrb[8].mxu0 }
 0x46a   :  { %330 = vst.msk [vmem:[#allocation7 + $0x8] sm:$0xff] %vm113_vm2, %v323_v58  ;;  %v1130_v59 = vpop.f32.mrb[9].mxu0 }
 0x46b   :  { %v326_v60 = vpop.f32.mrb[10].mxu0 }
 0x46c   :  { %v1131_v61 = vpop.f32.mrb[11].mxu0 }
 0x46d   :  { %v375_v62 = vpop.f32.mrb[8].mxu1 }
 0x46e   :  { %v1136_v63 = vpop.f32.mrb[9].mxu1  ;;  %v431_v1 = vsel %vm113_vm2, %v375_v62, -inf }
 0x46f   :  { %432 = vmax.xlane.f32.xlu1 %v431_v1  ;;  %v378_v2 = vpop.f32.mrb[10].mxu1 }
 0x470   :  { %v1137_v3 = vpop.f32.mrb[11].mxu1 }
 0x471   :  { %v425_v4 = vpop.f32.mrb[12].mxu0 }
 0x472   :  { %v1142_v5 = vpop.f32.mrb[13].mxu0  ;;  %v434_v6 = vsel %vm113_vm2, %v425_v4, -inf }
 0x473   :  { %435 = vmax.xlane.f32.xlu0 %v434_v6  ;;  %v428_v8 = vpop.f32.mrb[14].mxu0 }
 0x474   :  { %v1143_v9 = vpop.f32.mrb[15].mxu0 }
 0x480   :  { %455 = vrot.lane.b32.xlu1 %v1406_v7, %s1342_s10 }
 0x484   :  { %564 = vrot.lane.b32.xlu1 %v1406_v7, %s1343_s11 }
 0x489   :  { %503 = vrot.lane.b32.xlu0 %v1409_v11, %s1342_s10 }
 0x48d   :  { %562 = vrot.lane.b32.xlu0 %v1406_v7, %s1344_s12 }
 0x4fc   :  { %v433_v10 = vpop.xlane.xlu1 %432 }
 0x4fd   :  { %v437_v12 = vsub.f32 %v375_v62, %v433_v10 }
 0x4ff   :  { %v439_v13 = vmul.f32 1.442695, %v437_v12 }
 0x500   :  { %v456_v14 = vpop.permute.xlu1 %455  ;;  %v436_v15 = vpop.xlane.xlu0 %435 }
 0x501   :  { %1235 = vpow2.f32 %v439_v13  ;;  %v461_v16 = vsel %vm237_vm3, %v456_v14, 0  ;;  %v438_v17 = vsub.f32 %v425_v4, %v436_v15 }
 0x502   :  { %1145 = vmatpush3.bf16.msra.mxu1 %v461_v16 }
 0x503   :  { %v441_v18 = vmul.f32 1.442695, %v438_v17  ;;  %1156 = vmatprep.subr.bf16.mxu1 %v1337_v0 }
 0x504   :  { %v504_v19 = vpop.permute.xlu0 %503  ;;  %v565_v25 = vpop.permute.xlu1 %564 }
 0x505   :  { %1237 = vpow2.f32 %v441_v18  ;;  %v509_v20 = vsel %vm237_vm3, %v504_v19, 0  ;;  %v570_v32 = vsel %vm113_vm2, %v565_v25, 0 }
 0x506   :  { %1151 = vmatpush3.bf16.msra.mxu0 %v509_v20 }
 0x507   :  { %1162 = vmatprep.subr.bf16.mxu0 %v1337_v0 }
 0x508   :  { %v563_v37 = vpop.permute.xlu0 %562 }
 0x50b   :  { %v1236_v21 = vpop.eup %1235 }
 0x50c   :  { %v443_v22 = vsel %vm113_vm2, %v1236_v21, 0.0 }
 0x50d   :  { %444 = vadd.xlane.f32.xlu1 %v443_v22 }
 0x50f   :  { %v1238_v23 = vpop.eup %1237 }
 0x510   :  { %v446_v24 = vsel %vm113_vm2, %v1238_v23, 0.0 }
 0x511   :  { %447 = vadd.xlane.f32.xlu1 %v446_v24 }
 0x522   :  { %614 = vrot.lane.b32.xlu1 %v1409_v11, %s1343_s11 }
 0x526   :  { %612 = vrot.lane.b32.xlu1 %v1409_v11, %s1344_s12 }
 0x59a   :  { %v445_v26 = vpop.xlane.xlu1 %444 }
 0x59b   :  { %1239 = vrcp.f32 %v445_v26 }
 0x59e   :  { %v448_v27 = vpop.xlane.xlu1 %447 }
 0x59f   :  { %1241 = vrcp.f32 %v448_v27 }
 0x5a2   :  { %v615_v34 = vpop.permute.xlu1 %614 }
 0x5a3   :  { %v620_v36 = vsel %vm113_vm2, %v615_v34, 0 }
 0x5a5   :  { %v1240_v28 = vpop.eup %1239 }
 0x5a6   :  { %v451_v29 = vmul.f32 %v1240_v28, %v1236_v21  ;;  %v613_v38 = vpop.permute.xlu1 %612 }
 0x5a8   :  { %v453_v30 = vpack.c.bf16 %v451_v29, %v451_v29 }
 0x5a9   :  { %v1242_v31 = vpop.eup %1241 }
 0x5aa   :  { %v452_v33 = vmul.f32 %v1242_v31, %v1238_v23  ;;  %1147 = vmatmul.mubr.msk.bf16.vlgmr.msra.gmra.mrb[12].mxu1 %vm113_vm2, %v453_v30 }
 0x5ab   :  { %1157 = vmatpush3.bf16.xpose.msra.mxu1 %v570_v32  ;;  %1158 = vmatprep.mubr.msk.bf16.mxu1 %vm1338_vm0, %v1337_v0 }
 0x5ac   :  { %v454_v35 = vpack.c.bf16 %v452_v33, %v452_v33  ;;  %1168 = vmatprep.subr.bf16.mxu1 %v1337_v0 }
 0x5ae   :  { %1153 = vmatmul.mubr.msk.bf16.vlgmr.msra.gmra.mrb[16].mxu0 %vm113_vm2, %v454_v35 }
 0x5af   :  { %1163 = vmatpush3.bf16.xpose.msra.mxu0 %v620_v36  ;;  %1164 = vmatprep.mubr.msk.bf16.mxu0 %vm1338_vm0, %v1337_v0 }
 0x5b0   :  { %1174 = vmatprep.subr.bf16.mxu0 %v1337_v0 }
 0x5b2   :  { %1159 = vmatmul.mubr.msk.bf16.vlgmr.msra.gmra.mrb[16].mxu1 %vm113_vm2, %v563_v37 }
 0x5b3   :  { %1170 = vmatprep.mubr.msk.bf16.mxu1 %vm1338_vm0, %v1337_v0 }
 0x5b6   :  { %1165 = vmatmul.mubr.msk.bf16.vlgmr.msra.gmra.mrb[20].mxu0 %vm113_vm2, %v613_v38 }
 0x5b7   :  { %1176 = vmatprep.mubr.msk.bf16.mxu0 %vm1338_vm0, %v1337_v0 }
 0x67d   :  { %v1488_v39 = vpop.f32.mrb[12].mxu1 }
 0x67e   :  { %v1148_v40 = vpop.f32.mrb[13].mxu1 }
 0x67f   :  { %v500_v41 = vpop.f32.mrb[14].mxu1 }
 0x680   :  { %v1149_v42 = vpop.f32.mrb[15].mxu1 }
 0x681   :  { %v1490_v43 = vpop.f32.mrb[16].mxu0 }
 0x682   :  { %v1154_v44 = vpop.f32.mrb[17].mxu0 }
 0x683   :  { %v548_v45 = vpop.f32.mrb[18].mxu0 }
 0x684   :  { %v1155_v46 = vpop.f32.mrb[19].mxu0 }
 0x685   :  { %v606_v47 = vpop.f32.mrb[16].mxu1 }
 0x686   :  { %v1160_v48 = vpop.f32.mrb[17].mxu1  ;;  %v662_v49 = vsel %vm113_vm2, %v606_v47, -inf }
 0x687   :  { %663 = vmax.xlane.f32.xlu0 %v662_v49  ;;  %v609_v50 = vpop.f32.mrb[18].mxu1 }
 0x688   :  { %v1161_v51 = vpop.f32.mrb[19].mxu1 }
 0x689   :  { %v656_v52 = vpop.f32.mrb[20].mxu0 }
 0x68a   :  { %v1166_v53 = vpop.f32.mrb[21].mxu0  ;;  %v665_v54 = vsel %vm113_vm2, %v656_v52, -inf }
 0x68b   :  { %666 = vmax.xlane.f32.xlu1 %v665_v54  ;;  %v659_v55 = vpop.f32.mrb[22].mxu0 }
 0x68c   :  { %v1167_v56 = vpop.f32.mrb[23].mxu0 }
 0x69c   :  { %686 = vrot.lane.b32.xlu1 %v1406_v7, %s1345_s13 }
 0x6a0   :  { %795 = vrot.lane.b32.xlu1 %v1406_v7, %s1346_s14 }
 0x6a4   :  { %845 = vrot.lane.b32.xlu1 %v1409_v11, %s1346_s14 }
 0x6a8   :  { %843 = vrot.lane.b32.xlu1 %v1409_v11, %s1347_s15 }
 0x714   :  { %v664_v57 = vpop.xlane.xlu0 %663 }
 0x715   :  { %v668_v58 = vsub.f32 %v606_v47, %v664_v57 }
 0x717   :  { %v670_v59 = vmul.f32 1.442695, %v668_v58 }
 0x718   :  { %v667_v60 = vpop.xlane.xlu1 %666 }
 0x719   :  { %1243 = vpow2.f32 %v670_v59  ;;  %v669_v61 = vsub.f32 %v656_v52, %v667_v60 }
 0x71b   :  { %v672_v62 = vmul.f32 1.442695, %v669_v61 }
 0x71c   :  { %v687_v63 = vpop.permute.xlu1 %686 }
 0x71d   :  { %1245 = vpow2.f32 %v672_v62  ;;  %v692_v1 = vsel %vm237_vm3, %v687_v63, 0 }
 0x71e   :  { %1169 = vmatpush3.bf16.msra.mxu1 %v692_v1 }
 0x71f   :  { %1180 = vmatprep.subr.bf16.mxu1 %v1337_v0 }
 0x720   :  { %v796_v13 = vpop.permute.xlu1 %795 }
 0x721   :  { %v801_v17 = vsel %vm113_vm2, %v796_v13, 0 }
 0x723   :  { %v1244_v2 = vpop.eup %1243 }
 0x724   :  { %v674_v3 = vsel %vm113_vm2, %v1244_v2, 0.0  ;;  %v846_v19 = vpop.permute.xlu1 %845 }
 0x725   :  { %675 = vadd.xlane.f32.xlu0 %v674_v3  ;;  %v851_v21 = vsel %vm113_vm2, %v846_v19, 0 }
 0x727   :  { %v1246_v4 = vpop.eup %1245 }
 0x728   :  { %v677_v5 = vsel %vm113_vm2, %v1246_v4, 0.0  ;;  %v844_v23 = vpop.permute.xlu1 %843 }
 0x729   :  { %678 = vadd.xlane.f32.xlu0 %v677_v5 }
 0x73f   :  { %734 = vrot.lane.b32.xlu0 %v1409_v11, %s1345_s13 }
 0x743   :  { %793 = vrot.lane.b32.xlu0 %v1406_v7, %s1347_s15 }
 0x7b2   :  { %v676_v6 = vpop.xlane.xlu0 %675 }
 0x7b3   :  { %1247 = vrcp.f32 %v676_v6 }
 0x7b6   :  { %v679_v8 = vpop.xlane.xlu0 %678 }
 0x7b7   :  { %1249 = vrcp.f32 %v679_v8 }
 0x7ba   :  { %v735_v9 = vpop.permute.xlu0 %734 }
 0x7bb   :  { %v740_v10 = vsel %vm237_vm3, %v735_v9, 0 }
 0x7bc   :  { %1175 = vmatpush3.bf16.msra.mxu0 %v740_v10 }
 0x7bd   :  { %v1248_v12 = vpop.eup %1247  ;;  %1186 = vmatprep.subr.bf16.mxu0 %v1337_v0 }
 0x7be   :  { %v682_v14 = vmul.f32 %v1248_v12, %v1244_v2  ;;  %v794_v22 = vpop.permute.xlu0 %793 }
 0x7c0   :  { %v684_v15 = vpack.c.bf16 %v682_v14, %v682_v14 }
 0x7c1   :  { %v1250_v16 = vpop.eup %1249 }
 0x7c2   :  { %v683_v18 = vmul.f32 %v1250_v16, %v1246_v4  ;;  %1171 = vmatmul.mubr.msk.bf16.vlgmr.msra.gmra.mrb[20].mxu1 %vm113_vm2, %v684_v15 }
 0x7c3   :  { %1181 = vmatpush3.bf16.xpose.msra.mxu1 %v801_v17  ;;  %1182 = vmatprep.mubr.msk.bf16.mxu1 %vm1338_vm0, %v1337_v0 }
 0x7c4   :  { %v685_v20 = vpack.c.bf16 %v683_v18, %v683_v18  ;;  %1192 = vmatprep.subr.bf16.mxu1 %v1337_v0 }
 0x7c6   :  { %1177 = vmatmul.mubr.msk.bf16.vlgmr.msra.gmra.mrb[24].mxu0 %vm113_vm2, %v685_v20 }
 0x7c7   :  { %1187 = vmatpush3.bf16.xpose.msra.mxu0 %v851_v21  ;;  %1188 = vmatprep.mubr.msk.bf16.mxu0 %vm1338_vm0, %v1337_v0 }
 0x7c8   :  { %1198 = vmatprep.subr.bf16.mxu0 %v1337_v0 }
 0x7ca   :  { %1183 = vmatmul.mubr.msk.bf16.vlgmr.msra.gmra.mrb[24].mxu1 %vm113_vm2, %v794_v22 }
 0x7cb   :  { %1194 = vmatprep.mubr.msk.bf16.mxu1 %vm1338_vm0, %v1337_v0 }
 0x7ce   :  { %1189 = vmatmul.mubr.msk.bf16.vlgmr.msra.gmra.mrb[28].mxu0 %vm113_vm2, %v844_v23 }
 0x7cf   :  { %1200 = vmatprep.mubr.msk.bf16.mxu0 %vm1338_vm0, %v1337_v0 }
 0x895   :  { %v728_v24 = vpop.f32.mrb[20].mxu1 }
 0x896   :  { %v1172_v25 = vpop.f32.mrb[21].mxu1 }
 0x897   :  { %v731_v26 = vpop.f32.mrb[22].mxu1 }
 0x898   :  { %v1173_v27 = vpop.f32.mrb[23].mxu1 }
 0x899   :  { %v776_v28 = vpop.f32.mrb[24].mxu0 }
 0x89a   :  { %v1178_v29 = vpop.f32.mrb[25].mxu0 }
 0x89b   :  { %v779_v30 = vpop.f32.mrb[26].mxu0 }
 0x89c   :  { %v1179_v31 = vpop.f32.mrb[27].mxu0 }
 0x89d   :  { %v837_v32 = vpop.f32.mrb[24].mxu1 }
 0x89e   :  { %v1184_v33 = vpop.f32.mrb[25].mxu1  ;;  %v893_v34 = vsel %vm113_vm2, %v837_v32, -inf }
 0x89f   :  { %894 = vmax.xlane.f32.xlu0 %v893_v34  ;;  %v840_v35 = vpop.f32.mrb[26].mxu1 }
 0x8a0   :  { %v1185_v36 = vpop.f32.mrb[27].mxu1 }
 0x8a1   :  { %v887_v37 = vpop.f32.mrb[28].mxu0 }
 0x8a2   :  { %v1190_v38 = vpop.f32.mrb[29].mxu0  ;;  %v896_v40 = vsel %vm113_vm2, %v887_v37, -inf }
 0x8a3   :  { %897 = vmax.xlane.f32.xlu1 %v896_v40  ;;  %v890_v0 = vpop.f32.mrb[30].mxu0 }
 0x8a4   :  { %v1191_v41 = vpop.f32.mrb[31].mxu0 }
 0x8b4   :  { %917 = vrot.lane.b32.xlu1 %v1406_v7, %s1348_s16 }
 0x8b8   :  { %553 = vrot.lane.b32.xlu1 %v1488_v39, %s1333_s20 }
 0x8bc   :  { %555 = vrot.lane.b32.xlu1 %v1490_v43, %s1333_s20 }
 0x8c0   :  { %786 = vrot.lane.b32.xlu1 %v776_v28, %s1349_s17 }
 0x92c   :  { %v895_v42 = vpop.xlane.xlu0 %894 }
 0x92d   :  { %v899_v44 = vsub.f32 %v837_v32, %v895_v42 }
 0x92f   :  { %v901_v45 = vmul.f32 1.442695, %v899_v44 }
 0x930   :  { %v898_v46 = vpop.xlane.xlu1 %897 }
 0x931   :  { %1251 = vpow2.f32 %v901_v45  ;;  %v900_v47 = vsub.f32 %v887_v37, %v898_v46 }
 0x933   :  { %v903_v48 = vmul.f32 1.442695, %v900_v47 }
 0x934   :  { %v918_v49 = vpop.permute.xlu1 %917 }
 0x935   :  { %1253 = vpow2.f32 %v903_v48  ;;  %v923_v50 = vsel %vm237_vm3, %v918_v49, 0 }
 0x936   :  { %1193 = vmatpush3.bf16.msra.mxu1 %v923_v50 }
 0x938   :  { %v554_v7 = vpop.permute.xlu1 %553 }
 0x939   :  { %560 = vst.msk [vmem:[#allocation7] sm:$0xff] %vm559_vm4, %v554_v7 }
 0x93b   :  { %v1252_v39 = vpop.eup %1251 }
 0x93c   :  { %v556_v51 = vpop.permute.xlu1 %555  ;;  %v905_v43 = vsel %vm113_vm2, %v1252_v39, 0.0 }
 0x93d   :  { %561 = vst.msk [vmem:[#allocation7 + $0x8] sm:$0xff] %vm559_vm4, %v556_v51  ;;  %906 = vadd.xlane.f32.xlu0 %v905_v43 }
 0x93f   :  { %v1254_v52 = vpop.eup %1253 }
 0x940   :  { %v787_v53 = vpop.permute.xlu1 %786  ;;  %v908_v54 = vsel %vm113_vm2, %v1254_v52, 0.0 }
 0x941   :  { %792 = vst.msk [vmem:[#allocation7 + $0x8] sm:$0xff] %vm790_vm5, %v787_v53  ;;  %909 = vadd.xlane.f32.xlu0 %v908_v54 }
 0x957   :  { %965 = vrot.lane.b32.xlu0 %v1409_v11, %s1348_s16 }
 0x95b   :  { %784 = vrot.lane.b32.xlu0 %v728_v24, %s1349_s17 }
 0x9ca   :  { %v907_v55 = vpop.xlane.xlu0 %906 }
 0x9cb   :  { %1255 = vrcp.f32 %v907_v55 }
 0x9ce   :  { %v910_v56 = vpop.xlane.xlu0 %909 }
 0x9cf   :  { %1257 = vrcp.f32 %v910_v56 }
 0x9d2   :  { %v966_v57 = vpop.permute.xlu0 %965 }
 0x9d3   :  { %v971_v58 = vsel %vm237_vm3, %v966_v57, 0 }
 0x9d4   :  { %1199 = vmatpush3.bf16.msra.mxu0 %v971_v58 }
 0x9d5   :  { %v1256_v59 = vpop.eup %1255 }
 0x9d6   :  { %v913_v60 = vmul.f32 %v1256_v59, %v1252_v39  ;;  %v785_v61 = vpop.permute.xlu0 %784 }
 0x9d7   :  { %791 = vst.msk [vmem:[#allocation7] sm:$0xff] %vm790_vm5, %v785_v61 }
 0x9d8   :  { %v915_v62 = vpack.c.bf16 %v913_v60, %v913_v60 }
 0x9d9   :  { %v1258_v63 = vpop.eup %1257 }
 0x9da   :  { %v914_v1 = vmul.f32 %v1258_v63, %v1254_v52  ;;  %1195 = vmatmul.mubr.msk.bf16.vlgmr.msra.gmra.mrb[28].mxu1 %vm113_vm2, %v915_v62 }
 0x9dc   :  { %v916_v11 = vpack.c.bf16 %v914_v1, %v914_v1 }
 0x9de   :  { %1201 = vmatmul.mubr.msk.bf16.vlgmr.msra.gmra.mrb[32].mxu0 %vm113_vm2, %v916_v11 }
 0xaad   :  { %v959_v2 = vpop.f32.mrb[28].mxu1 }
 0xaae   :  { %1015 = vrot.lane.b32.xlu0 %v959_v2, %s1350_s18  ;;  %v1196_v3 = vpop.f32.mrb[29].mxu1 }
 0xaaf   :  { %v962_v4 = vpop.f32.mrb[30].mxu1 }
 0xab0   :  { %v1197_v5 = vpop.f32.mrb[31].mxu1 }
 0xab1   :  { %v1007_v6 = vpop.f32.mrb[32].mxu0 }
 0xab2   :  { %1017 = vrot.lane.b32.xlu1 %v1007_v6, %s1350_s18  ;;  %v1202_v8 = vpop.f32.mrb[33].mxu0 }
 0xab3   :  { %v1010_v9 = vpop.f32.mrb[34].mxu0 }
 0xab4   :  { %v1203_v10 = vpop.f32.mrb[35].mxu0 }
 0xb20   :  { %v1016_v12 = vpop.permute.xlu0 %1015 }
 0xb21   :  { %1022 = vst.msk [vmem:[#allocation7] sm:$0xff] %vm1021_vm6, %v1016_v12 }
 0xb24   :  { %v1018_v13 = vpop.permute.xlu1 %1017 }
 0xb25   :  { %1023 = vst.msk [vmem:[#allocation7 + $0x8] sm:$0xff] %vm1021_vm6, %v1018_v13 }
 0xb26   :  { %1314 = shalt.err (!%p1311_p6)
}
 0xb27   :  { %s1315_s26 = scalar_lea.hbm %s1557_s2, 256 }
 0xb28   :  { %p1316_p7 = scmp.ne.s32.totalorder %s1557_s2, %s1315_s26  ;;  %p1319_p8 = scmp.lt.u32.totalorder %s1315_s26, %s1557_s2 }
 0xb2a   :  { %p1321_p9 = pnand %p1319_p8, %p1316_p7 }
 0xb2c   :  { %1324 = shalt.err (!%p1321_p9)
}
 0xb2d   :  { %1035 = dma.vmem_to_hbm [thread:$0]  %s1030_s22, 256, %s1557_s2, [#allocation4], %s1332_s19, %s1332_s19, %s1333_s20  }
 0xb2e   :  { %1329 = dma.done.wait [#allocation4], 256  }
 0xb2f   :  { %1330 = vsyncadd [#allocation4], 4294967040 }
 0xb30   :  { %1039 = vsyncpa [#allocation3], 1 }
 0xb31   :  { %1040 = vsyncpa [#allocation6], 1 }
 0xb32   :  { %1041 = vsyncpa [#allocation4], 1 }

</bundles_post_ra>
